<compile_context>
chip_gen: v7x
topology: tpu7x:2x2x1
jax: 0.10.0
libtpu: 0.0.40
codegen_flags: <defaults>
</compile_context>

<pallas_src>
import functools

import jax
import jax.numpy as jnp
from jax.experimental import pallas as pl
from jax.experimental.pallas import tpu as pltpu


def _identity(t):
    return t


def _copy_kernel(x_ref, o_ref):
    """Fast path: fn == token_fn == Identity -> forward is a pure copy."""
    o_ref[...] = x_ref[...].astype(o_ref.dtype)


def token_fn_context_kernel(x_ref, o_ref, *, token_num, inverse, fn, token_fn,
                            seq_len):
    """Processes one (Bt, N, C) batch block per grid step.

    The concat of the PyTorch forward is never materialized: token_fn(tokens)
    and fn(features) are stored directly into disjoint N-slices of the output
    tile (full C in the lane dim -> dense lane stores).
    """
    if token_num == 0:
        # forward returns fn(features) with features == x
        o_ref[...] = fn(x_ref[...]).astype(o_ref.dtype)
        return

    if not inverse:
        # tokens = x[:, :token_num], features = x[:, token_num:]
        # out    = cat([token_fn(tokens), fn(features)], dim=1)
        tok_lo, tok_hi = 0, token_num
        feat_lo, feat_hi = token_num, seq_len
    else:
        # tokens = x[:, -token_num:], features = x[:, :-token_num]
        # out    = cat([fn(features), token_fn(tokens)], dim=1)
        feat_lo, feat_hi = 0, seq_len - token_num
        tok_lo, tok_hi = seq_len - token_num, seq_len

    o_ref[:, tok_lo:tok_hi, :] = token_fn(
        x_ref[:, tok_lo:tok_hi, :]).astype(o_ref.dtype)
    if feat_hi > feat_lo:
        o_ref[:, feat_lo:feat_hi, :] = fn(
            x_ref[:, feat_lo:feat_hi, :]).astype(o_ref.dtype)


def _pick_block_b(B, per_row_bytes, budget_bytes=4 << 20):
    """Largest divisor of B whose batch-block tile stays under budget_bytes."""
    best = 1
    for cand in range(1, B + 1):
        if B % cand == 0 and cand * per_row_bytes <= budget_bytes:
            best = cand
    return best


def token_fn_context(x, *, token_num=0, inverse=False, fn=None, token_fn=None,
                     block_b=None):
    """x: (B, N, C). Returns (B, N, C) per TokenFnContext.forward."""
    B, N, C = x.shape
    assert 0 <= token_num <= N, "token_num must be within the sequence length"

    identity_path = (fn is None) and (token_fn is None)
    fn = fn if fn is not None else _identity
    token_fn = token_fn if token_fn is not None else _identity

    # Batch blocking: biggest divisor of B whose tile fits the VMEM budget
    # (tile is double-buffered for input and output -> ~4x tile bytes live).
    per_row_bytes = N * C * x.dtype.itemsize
    if block_b is None:
        block_b = _pick_block_b(B, per_row_bytes)
    assert B % block_b == 0

    if identity_path:
        kern = _copy_kernel
    else:
        kern = functools.partial(
            token_fn_context_kernel,
            token_num=token_num, inverse=inverse,
            fn=fn, token_fn=token_fn, seq_len=N)

    grid_spec = pltpu.PrefetchScalarGridSpec(
        num_scalar_prefetch=0,
        grid=(B // block_b,),
        in_specs=[pl.BlockSpec((block_b, N, C), lambda b: (b, 0, 0))],
        out_specs=pl.BlockSpec((block_b, N, C), lambda b: (b, 0, 0)),
    )

    return pl.pallas_call(
        kern,
        out_shape=jax.ShapeDtypeStruct((B, N, C), x.dtype),
        grid_spec=grid_spec,
        compiler_params=pltpu.CompilerParams(
            dimension_semantics=("parallel",),
            vmem_limit_bytes=64 << 20),
    )(x)


def reference(x, *, token_num=0, inverse=False, fn=None, token_fn=None):
    """Pure-JAX mirror of the PyTorch TokenFnContext.forward."""
    fn = fn if fn is not None else _identity
    token_fn = token_fn if token_fn is not None else _identity

    if inverse:
        tokens = x[:, x.shape[1] - token_num:, :] if token_num > 0 else x[:, :0, :]
        features = x[:, :x.shape[1] - token_num, :] if token_num > 0 else x
    else:
        tokens = x[:, :token_num, :]
        features = x[:, token_num:, :]

    features = fn(features)
    if token_num == 0:
        return features
    tokens = token_fn(tokens)
    if inverse:
        return jnp.concatenate([features, tokens], axis=1)
    return jnp.concatenate([tokens, features], axis=1)


if __name__ == "__main__":
    # Small shapes implied by the module: (B, N, C) token sequences.
    B, N, C = 2, 8, 32
    key = jax.random.PRNGKey(0)
    x = jax.random.normal(key, (B, N, C), jnp.float32)

    # Case 1: defaults (token_num=0, fn/token_fn = Identity) -> identity copy.
    out0 = jax.block_until_ready(token_fn_context(x, token_num=0, inverse=False))
    assert out0.shape == (B, N, C)
    assert jnp.allclose(out0, reference(x, token_num=0, inverse=False),
                        rtol=1e-6, atol=1e-6), "mismatch (token_num=0)"

    # Case 2: token_num=1, inverse=False, Identity fns (cls-token-first layout).
    out1 = jax.block_until_ready(token_fn_context(x, token_num=1, inverse=False))
    assert jnp.allclose(out1, reference(x, token_num=1, inverse=False),
                        rtol=1e-6, atol=1e-6), "mismatch (token_num=1)"

    # Case 3: token_num=1 with non-identity elementwise fns (general path,
    # non-inverse): fn on features, token_fn on tokens, output re-concat.
    feat_fn = lambda t: jax.nn.gelu(t, approximate=True)
    tok_fn = lambda t: 0.5 * t + 1.0
    out2 = jax.block_until_ready(
        token_fn_context(x, token_num=1, inverse=False, fn=feat_fn, token_fn=tok_fn))
    ref2 = reference(x, token_num=1, inverse=False, fn=feat_fn, token_fn=tok_fn)
    assert jnp.allclose(out2, ref2, rtol=1e-5, atol=1e-5), "mismatch (fwd fns)"

    # Case 4: token_num=2, inverse=True, same non-identity fns (inverse split).
    out3 = jax.block_until_ready(
        token_fn_context(x, token_num=2, inverse=True, fn=feat_fn, token_fn=tok_fn))
    ref3 = reference(x, token_num=2, inverse=True, fn=feat_fn, token_fn=tok_fn)
    assert jnp.allclose(out3, ref3, rtol=1e-5, atol=1e-5), "mismatch (inverse)"

    print("KERNEL_OK")
</pallas_src>

<mosaic_0001>
module attributes {stable_mosaic.version = 11 : i64} {
  func.func @_copy_kernel(%arg0: i32, %arg1: memref<2x8x32xf32, #tpu.memory_space<vmem>>, %arg2: memref<2x8x32xf32, #tpu.memory_space<vmem>>) attributes {dimension_semantics = [#tpu.dimension_semantics<parallel>], iteration_bounds = array<i64: 1>, scalar_prefetch = 0 : i64, scratch_operands = 0 : i64, tpu.core_type = #tpu.core_type<tc>, window_params = [{transform_indices = @transform_0, window_bounds = array<i64: 2, 8, 32>}, {transform_indices = @transform_1, window_bounds = array<i64: 2, 8, 32>}]} {
    %c0 = arith.constant 0 : index
    %c0_0 = arith.constant 0 : index
    %c0_1 = arith.constant 0 : index
    %0 = vector.load %arg1[%c0, %c0_0, %c0_1] : memref<2x8x32xf32, #tpu.memory_space<vmem>>, vector<2x8x32xf32>
    %c0_2 = arith.constant 0 : index
    %c0_3 = arith.constant 0 : index
    %c0_4 = arith.constant 0 : index
    %1 = vector.load %arg2[%c0_2, %c0_3, %c0_4] : memref<2x8x32xf32, #tpu.memory_space<vmem>>, vector<2x8x32xf32>
    tpu.vector_store %arg2[%c0_2, %c0_3, %c0_4], %0 {strides = array<i32>} : memref<2x8x32xf32, #tpu.memory_space<vmem>>, vector<2x8x32xf32>,
    return
  }
  func.func @transform_0(%arg0: i32) -> (i32, i32, i32) {
    %c0_i32 = arith.constant 0 : i32
    %c0_i32_0 = arith.constant 0 : i32
    %c0_i32_1 = arith.constant 0 : i32
    return %arg0, %c0_i32, %c0_i32_0 : i32, i32, i32
  }
  func.func @transform_1(%arg0: i32) -> (i32, i32, i32) {
    %c0_i32 = arith.constant 0 : i32
    %c0_i32_0 = arith.constant 0 : i32
    %c0_i32_1 = arith.constant 0 : i32
    return %arg0, %c0_i32, %c0_i32_0 : i32, i32, i32
  }
}

</mosaic_0001>

<bundles_post_ra>
// kernel: tpu_custom_call.1
= control target key start
LH: loop header
LB: loop body
LE: loop exit
PB: predicated region body
PF: predicated region fallthrough
CT: control target
= control target key end

     0   :  { %6 = vsyncpa [#allocation3], 0  ;;  %s135_s0 = inlined_call_operand.hbm [shape: f32[2,8,32], index: 0, kind: input, shape index: {}]   ;;  %s136_s1 = inlined_call_operand.hbm [shape: f32[2,8,32], index: 1, kind: output, shape index: {}]  }
   0x1   :  { %7 = vsyncpa [#allocation4], 0  ;;  %s97_s6 = smov [#allocation2]   ;;  %s49_s10 = scalar_lea.hbm %s135_s0, 256 }
   0x2   :  { %s13_s7 = sshll.u32 %s97_s6, 4  ;;  %p50_p0 = scmp.ne.s32.totalorder %s135_s0, %s49_s10  ;;  %s14_s7 = int_to_ptr.vmem [resolvable:$true] %s13_s7 }
   0x3   :  { %p53_p1 = scmp.lt.u32.totalorder %s49_s10, %s135_s0 }
   0x5   :  { %p55_p2 = pnand %p53_p1, %p50_p0 }
   0x7   :  { %58 = shalt.err (!%p55_p2)
}
   0x8   :  { %s59_s15 = scalar_lea.vmem %s14_s7, 256  ;;  %p64_p4 = scmp.lt.s32.totalorder %s14_s7, %s14_s7 }
   0x9   :  { %p60_p3 = scmp.ne.s32.totalorder %s14_s7, %s59_s15  ;;  %p65_p5 = scmp.lt.s32.totalorder %s59_s15, %s59_s15 }
   0xb   :  { %p66_p6 = por %p65_p5, %p64_p4 }
   0xd   :  { %p67_p7 = pnand %p66_p6, %p60_p3 }
   0xf   :  { %70 = shalt.err (!%p67_p7)
}
  0x10   :  { %s98_s16 = smov 128   ;;  %s99_s17 = smov 8  }
  0x11   :  { %19 = dma.hbm_to_vmem [thread:$0]  %s135_s0, 256, %s14_s7, [#allocation3], %s98_s16, %s98_s16, %s99_s17  }
  0x12   :  { %93 = dma.done.wait [#allocation3], 256  }
  0x13   :  { %94 = vsyncadd [#allocation3], 4294967040  ;;  %s100_s20 = smov [#allocation5]   ;;  %vm25_vm0 = vcmask 261120   ;;  %v23_v0 = vld [vmem:[#allocation2] sm:$0xff]  ;;  %v24_v1 = vld [vmem:[#allocation2 + $0x8] sm:$0xff] }
  0x14   :  { %s33_s21 = sshll.u32 %s100_s20, 4  ;;  %26 = vst.msk [vmem:[#allocation5] sm:$0xff] %vm25_vm0, %v23_v0  ;;  %27 = vst.msk [vmem:[#allocation5 + $0x8] sm:$0xff] %vm25_vm0, %v24_v1  ;;  %s34_s21 = int_to_ptr.vmem [resolvable:$true] %s33_s21 }
  0x15   :  { %s71_s22 = scalar_lea.vmem %s34_s21, 256  ;;  %p76_p9 = scmp.lt.s32.totalorder %s34_s21, %s34_s21 }
  0x16   :  { %p72_p8 = scmp.ne.s32.totalorder %s34_s21, %s71_s22  ;;  %p77_p10 = scmp.lt.s32.totalorder %s71_s22, %s71_s22 }
  0x18   :  { %p78_p11 = por %p77_p10, %p76_p9 }
  0x1a   :  { %p79_p12 = pnand %p78_p11, %p72_p8 }
  0x1c   :  { %82 = shalt.err (!%p79_p12)
}
  0x1d   :  { %s83_s0 = scalar_lea.hbm %s136_s1, 256 }
  0x1e   :  { %p84_p13 = scmp.ne.s32.totalorder %s136_s1, %s83_s0  ;;  %p87_p0 = scmp.lt.u32.totalorder %s83_s0, %s136_s1 }
  0x20   :  { %p89_p1 = pnand %p87_p0, %p84_p13 }
  0x22   :  { %92 = shalt.err (!%p89_p1)
}
  0x23   :  { %39 = dma.vmem_to_hbm [thread:$0]  %s34_s21, 256, %s136_s1, [#allocation4], %s98_s16, %s98_s16, %s99_s17  }
  0x24   :  { %95 = dma.done.wait [#allocation4], 256  }
  0x25   :  { %96 = vsyncadd [#allocation4], 4294967040 }
  0x26   :  { %43 = vsyncpa [#allocation3], 1 }
  0x27   :  { %44 = vsyncpa [#allocation4], 1 }

</bundles_post_ra>
